<compile_context>
chip_gen: v7x
topology: tpu7x:2x2x1
jax: 0.10.0
libtpu: 0.0.40
codegen_flags: <defaults>
</compile_context>

<pallas_src>
import functools
import math

import jax
import jax.numpy as jnp
from jax import lax
from jax.experimental import pallas as pl
from jax.experimental.pallas import tpu as pltpu

_NBUF = 8  # number of in-flight row DMAs (ring of DMA semaphores)


def _token_embedding_kernel(scale, ids_ref, emb_hbm, out_ref, sems):
    """Gather TM table rows straight into the output block, then scale.

    ids_ref : (n_pad,) int32 in SMEM  -- scalar-prefetched token ids
    emb_hbm : (V, D) embedding table, left in HBM (memory_space=pl.ANY)
    out_ref : (TM, D) output block in VMEM (doubles as the gather buffer)
    sems    : (nbuf,) DMA semaphore ring
    """
    tm = out_ref.shape[0]
    n_ids = ids_ref.shape[0]
    nbuf = sems.shape[0]
    base = pl.program_id(0) * tm

    def start_row(t, tok, slot):
        pltpu.make_async_copy(
            emb_hbm.at[pl.ds(tok, 1)],   # (1, D) source row in HBM
            out_ref.at[pl.ds(t, 1)],     # (1, D) destination row in VMEM
            sems.at[slot],
        ).start()

    # Prime the DMA ring (tm >= nbuf is guaranteed by the wrapper).
    for t in range(nbuf):
        start_row(t, ids_ref[base + t], t)

    def body(t, carry):
        slot = t % nbuf
        # Hoist the SMEM id read for the row we are about to prefetch above
        # the wait; clamp keeps the read in-bounds on the last block.
        nxt_tok = ids_ref[jnp.minimum(base + t + nbuf, n_ids - 1)]

        # Wait for row t (descriptor only needs matching shape, not offset).
        pltpu.make_async_copy(
            emb_hbm.at[pl.ds(0, 1)],
            out_ref.at[pl.ds(t, 1)],
            sems.at[slot],
        ).wait()

        @pl.when(t + nbuf < tm)
        def _():
            start_row(t + nbuf, nxt_tok, slot)

        return carry

    lax.fori_loop(0, tm, body, 0)

    # Single in-place pass; fold sqrt(d_model) into it (no extra scale pass).
    out_ref[...] = (out_ref[...] * scale).astype(out_ref.dtype)


def token_embedding(tokens, embedding, *, block_tokens=128):
    """tokens: (B, S) int; embedding: (V, D) -> (B, S, D) scaled by sqrt(D)."""
    B, S = tokens.shape
    V, D = embedding.shape
    n = B * S
    scale = math.sqrt(D)  # == sqrt(d_model)

    # Token-block size: multiple of 8 (sublane), not larger than needed.
    tm = min(block_tokens, ((n + 7) // 8) * 8)
    tm = max(8, (tm // 8) * 8)
    n_pad = ((n + tm - 1) // tm) * tm
    num_blocks = n_pad // tm
    nbuf = min(_NBUF, tm)

    # Flat int32 ids, tail padded with a valid id (0); tail rows are dropped.
    ids = jnp.zeros((n_pad,), jnp.int32).at[:n].set(
        tokens.reshape(-1).astype(jnp.int32))

    itemsize = jnp.dtype(embedding.dtype).itemsize
    # Double-buffered output block + headroom (ids live in SMEM, table in HBM).
    vmem_bytes = 2 * tm * D * itemsize + (4 << 20)

    kernel = functools.partial(_token_embedding_kernel, scale)

    out_flat = pl.pallas_call(
        kernel,
        out_shape=jax.ShapeDtypeStruct((n_pad, D), embedding.dtype),
        grid_spec=pltpu.PrefetchScalarGridSpec(
            num_scalar_prefetch=1,
            grid=(num_blocks,),
            in_specs=[
                # Embedding table stays in HBM; rows are DMA-gathered manually.
                pl.BlockSpec(memory_space=pl.ANY),
            ],
            out_specs=pl.BlockSpec((tm, D), lambda i, ids_smem: (i, 0)),
            scratch_shapes=[
                pltpu.SemaphoreType.DMA((nbuf,)),
            ],
        ),
        compiler_params=pltpu.CompilerParams(
            dimension_semantics=("parallel",),
            vmem_limit_bytes=vmem_bytes,
        ),
    )(ids, embedding)

    return out_flat[:n].reshape(B, S, D)


if __name__ == "__main__":
    vocab_size = 64
    d_model = 128
    B, S = 2, 8

    key = jax.random.PRNGKey(0)
    k_tok, k_emb = jax.random.split(key)

    tokens = jax.random.randint(k_tok, (B, S), 0, vocab_size, dtype=jnp.int32)
    embedding = (jax.random.normal(k_emb, (vocab_size, d_model),
                                   dtype=jnp.float32) * 0.02)

    out = token_embedding(tokens, embedding)
    out = jax.block_until_ready(out)

    # Reference: plain JAX embedding lookup * sqrt(d_model).
    ref = jnp.take(embedding, tokens, axis=0) * math.sqrt(d_model)
    assert out.shape == (B, S, d_model)
    assert jnp.allclose(out, ref, atol=1e-6, rtol=1e-6)

    print("KERNEL_OK")
</pallas_src>

<mosaic_0001>
module attributes {stable_mosaic.version = 11 : i64} {
  func.func @_token_embedding_kernel(%arg0: i32, %arg1: memref<16xi32, #tpu.memory_space<smem>>, %arg2: memref<64x128xf32, #tpu.memory_space<any>>, %arg3: memref<16x128xf32, #tpu.memory_space<vmem>>, %arg4: memref<8x!tpu.dma_semaphore, #tpu.memory_space<semaphore_mem>>) attributes {dimension_semantics = [#tpu.dimension_semantics<parallel>], iteration_bounds = array<i64: 1>, scalar_prefetch = 1 : i64, scratch_operands = 1 : i64, tpu.core_type = #tpu.core_type<tc>, window_params = [{}, {transform_indices = @transform_1, window_bounds = array<i64: 16, 128>}]} {
    %c16_i32 = arith.constant 16 : i32
    %0 = arith.muli %arg0, %c16_i32 : i32
    %c0_i32 = arith.constant 0 : i32
    %1 = arith.addi %0, %c0_i32 : i32
    %2 = arith.index_cast %1 : i32 to index
    %3 = memref.load %arg1[%2] : memref<16xi32, #tpu.memory_space<smem>>
    %c0_i32_0 = arith.constant 0 : i32
    %c0_i32_1 = arith.constant 0 : i32
    %4 = tpu.memref_slice %arg2[%3, %c0_i32_1] : memref<64x128xf32, #tpu.memory_space<any>> -> memref<1x128xf32, #tpu.memory_space<any>>
    %c0_i32_2 = arith.constant 0 : i32
    %c0_i32_3 = arith.constant 0 : i32
    %5 = tpu.memref_slice %arg3[%c0_i32_2, %c0_i32_3] : memref<16x128xf32, #tpu.memory_space<vmem>> -> memref<1x128xf32, #tpu.memory_space<vmem>>
    %6 = tpu.memref_slice %arg4[%c0_i32_0] : memref<8x!tpu.dma_semaphore, #tpu.memory_space<semaphore_mem>> -> memref<1x!tpu.dma_semaphore, #tpu.memory_space<semaphore_mem>>
    %7 = tpu.memref_squeeze %6 : memref<1x!tpu.dma_semaphore, #tpu.memory_space<semaphore_mem>> -> memref<!tpu.dma_semaphore, #tpu.memory_space<semaphore_mem>>
    tpu.enqueue_dma source(%4 : memref<1x128xf32, #tpu.memory_space<any>>) target(%5 : memref<1x128xf32, #tpu.memory_space<vmem>>) target_semaphore(%7 : memref<!tpu.dma_semaphore, #tpu.memory_space<semaphore_mem>>)
    %c1_i32 = arith.constant 1 : i32
    %8 = arith.addi %0, %c1_i32 : i32
    %9 = arith.index_cast %8 : i32 to index
    %10 = memref.load %arg1[%9] : memref<16xi32, #tpu.memory_space<smem>>
    %c1_i32_4 = arith.constant 1 : i32
    %c0_i32_5 = arith.constant 0 : i32
    %11 = tpu.memref_slice %arg2[%10, %c0_i32_5] : memref<64x128xf32, #tpu.memory_space<any>> -> memref<1x128xf32, #tpu.memory_space<any>>
    %c1_i32_6 = arith.constant 1 : i32
    %c0_i32_7 = arith.constant 0 : i32
    %12 = tpu.memref_slice %arg3[%c1_i32_6, %c0_i32_7] : memref<16x128xf32, #tpu.memory_space<vmem>> -> memref<1x128xf32, #tpu.memory_space<vmem>>
    %13 = tpu.memref_slice %arg4[%c1_i32_4] : memref<8x!tpu.dma_semaphore, #tpu.memory_space<semaphore_mem>> -> memref<1x!tpu.dma_semaphore, #tpu.memory_space<semaphore_mem>>
    %14 = tpu.memref_squeeze %13 : memref<1x!tpu.dma_semaphore, #tpu.memory_space<semaphore_mem>> -> memref<!tpu.dma_semaphore, #tpu.memory_space<semaphore_mem>>
    tpu.enqueue_dma source(%11 : memref<1x128xf32, #tpu.memory_space<any>>) target(%12 : memref<1x128xf32, #tpu.memory_space<vmem>>) target_semaphore(%14 : memref<!tpu.dma_semaphore, #tpu.memory_space<semaphore_mem>>)
    %c2_i32 = arith.constant 2 : i32
    %15 = arith.addi %0, %c2_i32 : i32
    %16 = arith.index_cast %15 : i32 to index
    %17 = memref.load %arg1[%16] : memref<16xi32, #tpu.memory_space<smem>>
    %c2_i32_8 = arith.constant 2 : i32
    %c0_i32_9 = arith.constant 0 : i32
    %18 = tpu.memref_slice %arg2[%17, %c0_i32_9] : memref<64x128xf32, #tpu.memory_space<any>> -> memref<1x128xf32, #tpu.memory_space<any>>
    %c2_i32_10 = arith.constant 2 : i32
    %c0_i32_11 = arith.constant 0 : i32
    %19 = tpu.memref_slice %arg3[%c2_i32_10, %c0_i32_11] : memref<16x128xf32, #tpu.memory_space<vmem>> -> memref<1x128xf32, #tpu.memory_space<vmem>>
    %20 = tpu.memref_slice %arg4[%c2_i32_8] : memref<8x!tpu.dma_semaphore, #tpu.memory_space<semaphore_mem>> -> memref<1x!tpu.dma_semaphore, #tpu.memory_space<semaphore_mem>>
    %21 = tpu.memref_squeeze %20 : memref<1x!tpu.dma_semaphore, #tpu.memory_space<semaphore_mem>> -> memref<!tpu.dma_semaphore, #tpu.memory_space<semaphore_mem>>
    tpu.enqueue_dma source(%18 : memref<1x128xf32, #tpu.memory_space<any>>) target(%19 : memref<1x128xf32, #tpu.memory_space<vmem>>) target_semaphore(%21 : memref<!tpu.dma_semaphore, #tpu.memory_space<semaphore_mem>>)
    %c3_i32 = arith.constant 3 : i32
    %22 = arith.addi %0, %c3_i32 : i32
    %23 = arith.index_cast %22 : i32 to index
    %24 = memref.load %arg1[%23] : memref<16xi32, #tpu.memory_space<smem>>
    %c3_i32_12 = arith.constant 3 : i32
    %c0_i32_13 = arith.constant 0 : i32
    %25 = tpu.memref_slice %arg2[%24, %c0_i32_13] : memref<64x128xf32, #tpu.memory_space<any>> -> memref<1x128xf32, #tpu.memory_space<any>>
    %c3_i32_14 = arith.constant 3 : i32
    %c0_i32_15 = arith.constant 0 : i32
    %26 = tpu.memref_slice %arg3[%c3_i32_14, %c0_i32_15] : memref<16x128xf32, #tpu.memory_space<vmem>> -> memref<1x128xf32, #tpu.memory_space<vmem>>
    %27 = tpu.memref_slice %arg4[%c3_i32_12] : memref<8x!tpu.dma_semaphore, #tpu.memory_space<semaphore_mem>> -> memref<1x!tpu.dma_semaphore, #tpu.memory_space<semaphore_mem>>
    %28 = tpu.memref_squeeze %27 : memref<1x!tpu.dma_semaphore, #tpu.memory_space<semaphore_mem>> -> memref<!tpu.dma_semaphore, #tpu.memory_space<semaphore_mem>>
    tpu.enqueue_dma source(%25 : memref<1x128xf32, #tpu.memory_space<any>>) target(%26 : memref<1x128xf32, #tpu.memory_space<vmem>>) target_semaphore(%28 : memref<!tpu.dma_semaphore, #tpu.memory_space<semaphore_mem>>)
    %c4_i32 = arith.constant 4 : i32
    %29 = arith.addi %0, %c4_i32 : i32
    %30 = arith.index_cast %29 : i32 to index
    %31 = memref.load %arg1[%30] : memref<16xi32, #tpu.memory_space<smem>>
    %c4_i32_16 = arith.constant 4 : i32
    %c0_i32_17 = arith.constant 0 : i32
    %32 = tpu.memref_slice %arg2[%31, %c0_i32_17] : memref<64x128xf32, #tpu.memory_space<any>> -> memref<1x128xf32, #tpu.memory_space<any>>
    %c4_i32_18 = arith.constant 4 : i32
    %c0_i32_19 = arith.constant 0 : i32
    %33 = tpu.memref_slice %arg3[%c4_i32_18, %c0_i32_19] : memref<16x128xf32, #tpu.memory_space<vmem>> -> memref<1x128xf32, #tpu.memory_space<vmem>>
    %34 = tpu.memref_slice %arg4[%c4_i32_16] : memref<8x!tpu.dma_semaphore, #tpu.memory_space<semaphore_mem>> -> memref<1x!tpu.dma_semaphore, #tpu.memory_space<semaphore_mem>>
    %35 = tpu.memref_squeeze %34 : memref<1x!tpu.dma_semaphore, #tpu.memory_space<semaphore_mem>> -> memref<!tpu.dma_semaphore, #tpu.memory_space<semaphore_mem>>
    tpu.enqueue_dma source(%32 : memref<1x128xf32, #tpu.memory_space<any>>) target(%33 : memref<1x128xf32, #tpu.memory_space<vmem>>) target_semaphore(%35 : memref<!tpu.dma_semaphore, #tpu.memory_space<semaphore_mem>>)
    %c5_i32 = arith.constant 5 : i32
    %36 = arith.addi %0, %c5_i32 : i32
    %37 = arith.index_cast %36 : i32 to index
    %38 = memref.load %arg1[%37] : memref<16xi32, #tpu.memory_space<smem>>
    %c5_i32_20 = arith.constant 5 : i32
    %c0_i32_21 = arith.constant 0 : i32
    %39 = tpu.memref_slice %arg2[%38, %c0_i32_21] : memref<64x128xf32, #tpu.memory_space<any>> -> memref<1x128xf32, #tpu.memory_space<any>>
    %c5_i32_22 = arith.constant 5 : i32
    %c0_i32_23 = arith.constant 0 : i32
    %40 = tpu.memref_slice %arg3[%c5_i32_22, %c0_i32_23] : memref<16x128xf32, #tpu.memory_space<vmem>> -> memref<1x128xf32, #tpu.memory_space<vmem>>
    %41 = tpu.memref_slice %arg4[%c5_i32_20] : memref<8x!tpu.dma_semaphore, #tpu.memory_space<semaphore_mem>> -> memref<1x!tpu.dma_semaphore, #tpu.memory_space<semaphore_mem>>
    %42 = tpu.memref_squeeze %41 : memref<1x!tpu.dma_semaphore, #tpu.memory_space<semaphore_mem>> -> memref<!tpu.dma_semaphore, #tpu.memory_space<semaphore_mem>>
    tpu.enqueue_dma source(%39 : memref<1x128xf32, #tpu.memory_space<any>>) target(%40 : memref<1x128xf32, #tpu.memory_space<vmem>>) target_semaphore(%42 : memref<!tpu.dma_semaphore, #tpu.memory_space<semaphore_mem>>)
    %c6_i32 = arith.constant 6 : i32
    %43 = arith.addi %0, %c6_i32 : i32
    %44 = arith.index_cast %43 : i32 to index
    %45 = memref.load %arg1[%44] : memref<16xi32, #tpu.memory_space<smem>>
    %c6_i32_24 = arith.constant 6 : i32
    %c0_i32_25 = arith.constant 0 : i32
    %46 = tpu.memref_slice %arg2[%45, %c0_i32_25] : memref<64x128xf32, #tpu.memory_space<any>> -> memref<1x128xf32, #tpu.memory_space<any>>
    %c6_i32_26 = arith.constant 6 : i32
    %c0_i32_27 = arith.constant 0 : i32
    %47 = tpu.memref_slice %arg3[%c6_i32_26, %c0_i32_27] : memref<16x128xf32, #tpu.memory_space<vmem>> -> memref<1x128xf32, #tpu.memory_space<vmem>>
    %48 = tpu.memref_slice %arg4[%c6_i32_24] : memref<8x!tpu.dma_semaphore, #tpu.memory_space<semaphore_mem>> -> memref<1x!tpu.dma_semaphore, #tpu.memory_space<semaphore_mem>>
    %49 = tpu.memref_squeeze %48 : memref<1x!tpu.dma_semaphore, #tpu.memory_space<semaphore_mem>> -> memref<!tpu.dma_semaphore, #tpu.memory_space<semaphore_mem>>
    tpu.enqueue_dma source(%46 : memref<1x128xf32, #tpu.memory_space<any>>) target(%47 : memref<1x128xf32, #tpu.memory_space<vmem>>) target_semaphore(%49 : memref<!tpu.dma_semaphore, #tpu.memory_space<semaphore_mem>>)
    %c7_i32 = arith.constant 7 : i32
    %50 = arith.addi %0, %c7_i32 : i32
    %51 = arith.index_cast %50 : i32 to index
    %52 = memref.load %arg1[%51] : memref<16xi32, #tpu.memory_space<smem>>
    %c7_i32_28 = arith.constant 7 : i32
    %c0_i32_29 = arith.constant 0 : i32
    %53 = tpu.memref_slice %arg2[%52, %c0_i32_29] : memref<64x128xf32, #tpu.memory_space<any>> -> memref<1x128xf32, #tpu.memory_space<any>>
    %c7_i32_30 = arith.constant 7 : i32
    %c0_i32_31 = arith.constant 0 : i32
    %54 = tpu.memref_slice %arg3[%c7_i32_30, %c0_i32_31] : memref<16x128xf32, #tpu.memory_space<vmem>> -> memref<1x128xf32, #tpu.memory_space<vmem>>
    %55 = tpu.memref_slice %arg4[%c7_i32_28] : memref<8x!tpu.dma_semaphore, #tpu.memory_space<semaphore_mem>> -> memref<1x!tpu.dma_semaphore, #tpu.memory_space<semaphore_mem>>
    %56 = tpu.memref_squeeze %55 : memref<1x!tpu.dma_semaphore, #tpu.memory_space<semaphore_mem>> -> memref<!tpu.dma_semaphore, #tpu.memory_space<semaphore_mem>>
    tpu.enqueue_dma source(%53 : memref<1x128xf32, #tpu.memory_space<any>>) target(%54 : memref<1x128xf32, #tpu.memory_space<vmem>>) target_semaphore(%56 : memref<!tpu.dma_semaphore, #tpu.memory_space<semaphore_mem>>)
    %c0_i32_32 = arith.constant 0 : i32
    %c16_i32_33 = arith.constant 16 : i32
    %57 = arith.addi %c0_i32_32, %c16_i32_33 : i32
    %c1_i32_34 = arith.constant 1 : i32
    scf.for %arg5 = %c0_i32_32 to %57 step %c1_i32_34  : i32 {
      %c8_i32 = arith.constant 8 : i32
      %c0_i32_39 = arith.constant 0 : i32
      %62 = arith.cmpi eq, %c8_i32, %c0_i32_39 : i32
      %c1_i32_40 = arith.constant 1 : i32
      %63 = arith.select %62, %c1_i32_40, %c8_i32 : i32
      %64 = arith.remsi %arg5, %63 : i32
      %c0_i32_41 = arith.constant 0 : i32
      %65 = arith.cmpi ne, %64, %c0_i32_41 : i32
      %c0_i32_42 = arith.constant 0 : i32
      %66 = arith.cmpi slt, %64, %c0_i32_42 : i32
      %c0_i32_43 = arith.constant 0 : i32
      %67 = arith.cmpi slt, %63, %c0_i32_43 : i32
      %68 = arith.xori %66, %67 : i1
      %69 = arith.andi %68, %65 : i1
      %70 = arith.addi %64, %63 : i32
      %71 = arith.select %69, %70, %64 : i32
      %72 = arith.addi %0, %arg5 : i32
      %c8_i32_44 = arith.constant 8 : i32
      %73 = arith.addi %72, %c8_i32_44 : i32
      %c15_i32 = arith.constant 15 : i32
      %74 = arith.minsi %73, %c15_i32 : i32
      %75 = arith.index_cast %74 : i32 to index
      %76 = memref.load %arg1[%75] : memref<16xi32, #tpu.memory_space<smem>>
      %c0_i32_45 = arith.constant 0 : i32
      %c0_i32_46 = arith.constant 0 : i32
      %77 = tpu.memref_slice %arg2[%c0_i32_45, %c0_i32_46] : memref<64x128xf32, #tpu.memory_space<any>> -> memref<1x128xf32, #tpu.memory_space<any>>
      %c0_i32_47 = arith.constant 0 : i32
      %78 = tpu.memref_slice %arg3[%arg5, %c0_i32_47] : memref<16x128xf32, #tpu.memory_space<vmem>> -> memref<1x128xf32, #tpu.memory_space<vmem>>
      %79 = tpu.memref_slice %arg4[%71] : memref<8x!tpu.dma_semaphore, #tpu.memory_space<semaphore_mem>> -> memref<1x!tpu.dma_semaphore, #tpu.memory_space<semaphore_mem>>
      %80 = tpu.memref_squeeze %79 : memref<1x!tpu.dma_semaphore, #tpu.memory_space<semaphore_mem>> -> memref<!tpu.dma_semaphore, #tpu.memory_space<semaphore_mem>>
      tpu.wait_dma2 semaphore(%80 : memref<!tpu.dma_semaphore, #tpu.memory_space<semaphore_mem>>) src(%77 : memref<1x128xf32, #tpu.memory_space<any>>) dst(%78 : memref<1x128xf32, #tpu.memory_space<vmem>>)
      %c8_i32_48 = arith.constant 8 : i32
      %81 = arith.addi %arg5, %c8_i32_48 : i32
      %c16_i32_49 = arith.constant 16 : i32
      %82 = arith.cmpi slt, %81, %c16_i32_49 : i32
      %83 = arith.extui %82 : i1 to i32
      %c0_i32_50 = arith.constant 0 : i32
      %84 = arith.cmpi ne, %83, %c0_i32_50 : i32
      scf.if %84 {
        %c8_i32_51 = arith.constant 8 : i32
        %85 = arith.addi %arg5, %c8_i32_51 : i32
        %c0_i32_52 = arith.constant 0 : i32
        %86 = tpu.memref_slice %arg2[%76, %c0_i32_52] : memref<64x128xf32, #tpu.memory_space<any>> -> memref<1x128xf32, #tpu.memory_space<any>>
        %c0_i32_53 = arith.constant 0 : i32
        %87 = tpu.memref_slice %arg3[%85, %c0_i32_53] : memref<16x128xf32, #tpu.memory_space<vmem>> -> memref<1x128xf32, #tpu.memory_space<vmem>>
        %88 = tpu.memref_slice %arg4[%71] : memref<8x!tpu.dma_semaphore, #tpu.memory_space<semaphore_mem>> -> memref<1x!tpu.dma_semaphore, #tpu.memory_space<semaphore_mem>>
        %89 = tpu.memref_squeeze %88 : memref<1x!tpu.dma_semaphore, #tpu.memory_space<semaphore_mem>> -> memref<!tpu.dma_semaphore, #tpu.memory_space<semaphore_mem>>
        tpu.enqueue_dma source(%86 : memref<1x128xf32, #tpu.memory_space<any>>) target(%87 : memref<1x128xf32, #tpu.memory_space<vmem>>) target_semaphore(%89 : memref<!tpu.dma_semaphore, #tpu.memory_space<semaphore_mem>>)
      } else {
      }
    }
    %c16_i32_35 = arith.constant 16 : i32
    %c0 = arith.constant 0 : index
    %c0_36 = arith.constant 0 : index
    %58 = vector.load %arg3[%c0, %c0_36] : memref<16x128xf32, #tpu.memory_space<vmem>>, vector<16x128xf32>
    %cst = arith.constant 11.3137083 : f32
    %59 = vector.broadcast %cst : f32 to vector<16x128xf32>
    %60 = arith.mulf %58, %59 : vector<16x128xf32>
    %c0_37 = arith.constant 0 : index
    %c0_38 = arith.constant 0 : index
    %61 = vector.load %arg3[%c0_37, %c0_38] : memref<16x128xf32, #tpu.memory_space<vmem>>, vector<16x128xf32>
    tpu.vector_store %arg3[%c0_37, %c0_38], %60 {strides = array<i32>} : memref<16x128xf32, #tpu.memory_space<vmem>>, vector<16x128xf32>,
    return
  }
  func.func @transform_1(%arg0: i32, %arg1: memref<16xi32, #tpu.memory_space<smem>>) -> (i32, i32) {
    %c0_i32 = arith.constant 0 : i32
    %c0_i32_0 = arith.constant 0 : i32
    return %arg0, %c0_i32 : i32, i32
  }
}

</mosaic_0001>

<bundles_post_ra>
// kernel: tpu_custom_call.1
= control target key start
LH: loop header
LB: loop body
LE: loop exit
PB: predicated region body
PF: predicated region fallthrough
CT: control target
= control target key end

     0   :  { %s838_s0 = inlined_call_operand.hbm [shape: s32[16], index: 0, kind: input, shape index: {}]   ;;  %s839_s1 = inlined_call_operand.hbm [shape: f32[64,128], index: 1, kind: input, shape index: {}]   ;;  %s840_s2 = inlined_call_operand.hbm [shape: f32[16,128], index: 2, kind: output, shape index: {}]  }
   0x1   :  { %s345_s11 = scalar_lea.hbm %s838_s0, 16 }
   0x2   :  { %p346_p0 = scmp.ne.s32.totalorder %s838_s0, %s345_s11  ;;  %p349_p1 = scmp.lt.u32.totalorder %s345_s11, %s838_s0 }
   0x4   :  { %p351_p2 = pnand %p349_p1, %p346_p0 }
   0x6   :  { %354 = shalt.err (!%p351_p2)  }
   0x7   :  { %s611_s16 = smov [#allocation4]  }
   0x8   :  { %8 = dma.hbm_to_smem %s838_s0, 16, %s611_s16, [#allocation3] }
   0x9   :  { %601 = dma.done.wait [#allocation3], 16 }
   0xa   :  { %602 = vsyncadd [#allocation3], 4294967280 }
   0xb   :  { %10 = sfence }
   0xc   :  { %11 = vsyncpa [#allocation6], 0  ;;  %s13_s19 = sld [smem:[#allocation4]]  ;;  %s612_s20 = smov [#allocation5]  }
   0xd   :  { %s23_s21 = sshll.u32 %s612_s20, 4  ;;  %s649_s22 = sld [smem:[#allocation4 + $0x1]]  ;;  %s651_s21 = int_to_ptr.vmem [resolvable:$true] %s23_s21 }
   0xe   :  { %s613_s23 = smov [#allocation5 + $0x1]   ;;  %s653_s25 = sld [smem:[#allocation4 + $0x2]] }
   0xf   :  { %s40_s24 = sshll.u32 %s613_s23, 4  ;;  %s614_s26 = smov [#allocation5 + $0x2]   ;;  %s655_s24 = int_to_ptr.vmem [resolvable:$true] %s40_s24 }
  0x10   :  { %s57_s0 = sshll.u32 %s614_s26, 4  ;;  %s657_s27 = sld [smem:[#allocation4 + $0x3]]  ;;  %s659_s0 = int_to_ptr.vmem [resolvable:$true] %s57_s0 }
  0x11   :  { %s668_s8 = scalar_lea.hbm %s839_s1, 1024 }
  0x12   :  { %s295_s28 = sshll.u32 %s13_s19, 4 }
  0x13   :  { %s15_s3 = scalar_lea.hbm %s839_s1, %s295_s28  ;;  %s297_s4 = sshll.u32 %s649_s22, 4 }
  0x14   :  { %s355_s5 = scalar_lea.hbm %s15_s3, 16  ;;  %p358_p4 = scmp.lt.u32.totalorder %s15_s3, %s839_s1 }
  0x15   :  { %p356_p3 = scmp.ne.s32.totalorder %s15_s3, %s355_s5  ;;  %p359_p5 = scmp.lt.u32.totalorder %s668_s8, %s355_s5 }
  0x16   :  { %p361_p7 = scmp.lt.u32.totalorder %s355_s5, %s15_s3 }
  0x17   :  { %p360_p6 = por %p359_p5, %p358_p4 }
  0x19   :  { %p362_p8 = por %p361_p7, %p360_p6 }
  0x1b   :  { %p363_p9 = pnand %p362_p8, %p356_p3 }
  0x1d   :  { %366 = shalt.err (!%p363_p9)  }
  0x1e   :  { %s367_s11 = scalar_lea.vmem %s651_s21, 16  ;;  %s677_s12 = scalar_lea.vmem %s651_s21, 256 }
  0x1f   :  { %p368_p10 = scmp.ne.s32.totalorder %s651_s21, %s367_s11  ;;  %p841_p11 = scmp.lt.s32.totalorder %s651_s21, %s651_s21 }
  0x20   :  { %p373_p12 = scmp.lt.s32.totalorder %s677_s12, %s367_s11 }
  0x22   :  { %p374_p13 = por %p373_p12, %p841_p11 }
  0x24   :  { %p375_p0 = pnand %p374_p13, %p368_p10 }
  0x26   :  { %378 = shalt.err (!%p375_p0)  }
  0x27   :  { %26 = dma.hbm_to_vmem [thread:$0]  %s15_s3, 16, %s651_s21, [#allocation2] }
  0x28   :  { %s30_s15 = scalar_lea.hbm %s839_s1, %s297_s4  ;;  %s299_s16 = sshll.u32 %s653_s25, 4 }
  0x29   :  { %s379_s17 = scalar_lea.hbm %s30_s15, 16  ;;  %p382_p2 = scmp.lt.u32.totalorder %s30_s15, %s839_s1 }
  0x2a   :  { %p380_p1 = scmp.ne.s32.totalorder %s30_s15, %s379_s17  ;;  %p383_p3 = scmp.lt.u32.totalorder %s668_s8, %s379_s17 }
  0x2b   :  { %p385_p5 = scmp.lt.u32.totalorder %s379_s17, %s30_s15 }
  0x2c   :  { %p384_p4 = por %p383_p3, %p382_p2 }
  0x2e   :  { %p386_p6 = por %p385_p5, %p384_p4 }
  0x30   :  { %p387_p7 = pnand %p386_p6, %p380_p1 }
  0x32   :  { %390 = shalt.err (!%p387_p7)  }
  0x33   :  { %s391_s20 = scalar_lea.vmem %s655_s24, 16  ;;  %p396_p9 = scmp.lt.s32.totalorder %s655_s24, %s651_s21 }
  0x34   :  { %p392_p8 = scmp.ne.s32.totalorder %s655_s24, %s391_s20  ;;  %p397_p10 = scmp.lt.s32.totalorder %s677_s12, %s391_s20 }
  0x36   :  { %p398_p12 = por %p397_p10, %p396_p9 }
  0x38   :  { %p399_p13 = pnand %p398_p12, %p392_p8 }
  0x3a   :  { %402 = shalt.err (!%p399_p13)  }
  0x3b   :  { %43 = dma.hbm_to_vmem [thread:$0]  %s30_s15, 16, %s655_s24, [#allocation2 + $0x1] }
  0x3c   :  { %s47_s25 = scalar_lea.hbm %s839_s1, %s299_s16  ;;  %s301_s26 = sshll.u32 %s657_s27, 4 }
  0x3d   :  { %s403_s28 = scalar_lea.hbm %s47_s25, 16  ;;  %p406_p1 = scmp.lt.u32.totalorder %s47_s25, %s839_s1 }
  0x3e   :  { %p404_p0 = scmp.ne.s32.totalorder %s47_s25, %s403_s28  ;;  %p407_p2 = scmp.lt.u32.totalorder %s668_s8, %s403_s28 }
  0x3f   :  { %p409_p4 = scmp.lt.u32.totalorder %s403_s28, %s47_s25 }
  0x40   :  { %p408_p3 = por %p407_p2, %p406_p1 }
  0x42   :  { %p410_p5 = por %p409_p4, %p408_p3 }
  0x44   :  { %p411_p6 = pnand %p410_p5, %p404_p0 }
  0x46   :  { %414 = shalt.err (!%p411_p6)  }
  0x47   :  { %s415_s24 = scalar_lea.vmem %s659_s0, 16  ;;  %p420_p8 = scmp.lt.s32.totalorder %s659_s0, %s651_s21 }
  0x48   :  { %p416_p7 = scmp.ne.s32.totalorder %s659_s0, %s415_s24  ;;  %p421_p9 = scmp.lt.s32.totalorder %s677_s12, %s415_s24 }
  0x4a   :  { %p422_p10 = por %p421_p9, %p420_p8 }
  0x4c   :  { %p423_p12 = pnand %p422_p10, %p416_p7 }
  0x4e   :  { %426 = shalt.err (!%p423_p12)  }
  0x4f   :  { %60 = dma.hbm_to_vmem [thread:$0]  %s47_s25, 16, %s659_s0, [#allocation2 + $0x2] }
  0x50   :  { %s64_s4 = scalar_lea.hbm %s839_s1, %s301_s26  ;;  %s615_s5 = smov [#allocation5 + $0x3]  }
  0x51   :  { %s74_s6 = sshll.u32 %s615_s5, 4  ;;  %s717_s7 = sld [smem:[#allocation4 + $0x4]]  ;;  %s75_s6 = int_to_ptr.vmem [resolvable:$true] %s74_s6 }
  0x52   :  { %s427_s9 = scalar_lea.hbm %s64_s4, 16  ;;  %p430_p0 = scmp.lt.u32.totalorder %s64_s4, %s839_s1 }
  0x53   :  { %p428_p13 = scmp.ne.s32.totalorder %s64_s4, %s427_s9  ;;  %p431_p1 = scmp.lt.u32.totalorder %s668_s8, %s427_s9 }
  0x54   :  { %p433_p3 = scmp.lt.u32.totalorder %s427_s9, %s64_s4 }
  0x55   :  { %p432_p2 = por %p431_p1, %p430_p0 }
  0x57   :  { %p434_p4 = por %p433_p3, %p432_p2 }
  0x59   :  { %p435_p5 = pnand %p434_p4, %p428_p13 }
  0x5b   :  { %438 = shalt.err (!%p435_p5)  }
  0x5c   :  { %s439_s0 = scalar_lea.vmem %s75_s6, 16  ;;  %p444_p7 = scmp.lt.s32.totalorder %s75_s6, %s651_s21 }
  0x5d   :  { %p440_p6 = scmp.ne.s32.totalorder %s75_s6, %s439_s0  ;;  %p445_p8 = scmp.lt.s32.totalorder %s677_s12, %s439_s0 }
  0x5f   :  { %p446_p9 = por %p445_p8, %p444_p7 }
  0x61   :  { %p447_p10 = pnand %p446_p9, %p440_p6 }
  0x63   :  { %450 = shalt.err (!%p447_p10)  }
  0x64   :  { %77 = dma.hbm_to_vmem [thread:$0]  %s64_s4, 16, %s75_s6, [#allocation2 + $0x3] }
  0x65   :  { %s616_s13 = smov [#allocation5 + $0x4]   ;;  %s725_s15 = sld [smem:[#allocation4 + $0x5]] }
  0x66   :  { %s91_s14 = sshll.u32 %s616_s13, 4  ;;  %s617_s16 = smov [#allocation5 + $0x5]   ;;  %s92_s14 = int_to_ptr.vmem [resolvable:$true] %s91_s14 }
  0x67   :  { %s108_s17 = sshll.u32 %s617_s16, 4  ;;  %s727_s18 = sld [smem:[#allocation4 + $0x6]]  ;;  %s730_s17 = int_to_ptr.vmem [resolvable:$true] %s108_s17 }
  0x68   :  { %s303_s19 = sshll.u32 %s717_s7, 4 }
  0x69   :  { %s81_s23 = scalar_lea.hbm %s839_s1, %s303_s19 }
  0x6a   :  { %s451_s25 = scalar_lea.hbm %s81_s23, 16  ;;  %p454_p13 = scmp.lt.u32.totalorder %s81_s23, %s839_s1 }
  0x6b   :  { %p452_p12 = scmp.ne.s32.totalorder %s81_s23, %s451_s25  ;;  %p455_p0 = scmp.lt.u32.totalorder %s668_s8, %s451_s25 }
  0x6c   :  { %p457_p2 = scmp.lt.u32.totalorder %s451_s25, %s81_s23 }
  0x6d   :  { %p456_p1 = por %p455_p0, %p454_p13 }
  0x6f   :  { %p458_p3 = por %p457_p2, %p456_p1 }
  0x71   :  { %p459_p4 = pnand %p458_p3, %p452_p12 }
  0x73   :  { %462 = shalt.err (!%p459_p4)  }
  0x74   :  { %s463_s29 = scalar_lea.vmem %s92_s14, 16  ;;  %p468_p6 = scmp.lt.s32.totalorder %s92_s14, %s651_s21 }
  0x75   :  { %p464_p5 = scmp.ne.s32.totalorder %s92_s14, %s463_s29  ;;  %p469_p7 = scmp.lt.s32.totalorder %s677_s12, %s463_s29 }
  0x77   :  { %p470_p8 = por %p469_p7, %p468_p6 }
  0x79   :  { %p471_p9 = pnand %p470_p8, %p464_p5 }
  0x7b   :  { %474 = shalt.err (!%p471_p9)  }
  0x7c   :  { %94 = dma.hbm_to_vmem [thread:$0]  %s81_s23, 16, %s92_s14, [#allocation2 + $0x4] }
  0x7d   :  { %s305_s30 = sshll.u32 %s725_s15, 4  ;;  %s618_s24 = smov [#allocation5 + $0x6]  }
  0x7e   :  { %s125_s27 = sshll.u32 %s618_s24, 4  ;;  %s98_s5 = scalar_lea.hbm %s839_s1, %s305_s30  ;;  %s745_s27 = int_to_ptr.vmem [resolvable:$true] %s125_s27 }
  0x7f   :  { %s475_s6 = scalar_lea.hbm %s98_s5, 16  ;;  %p478_p12 = scmp.lt.u32.totalorder %s98_s5, %s839_s1 }
  0x80   :  { %p476_p10 = scmp.ne.s32.totalorder %s98_s5, %s475_s6  ;;  %p479_p13 = scmp.lt.u32.totalorder %s668_s8, %s475_s6 }
  0x81   :  { %p481_p1 = scmp.lt.u32.totalorder %s475_s6, %s98_s5 }
  0x82   :  { %p480_p0 = por %p479_p13, %p478_p12 }
  0x84   :  { %p482_p2 = por %p481_p1, %p480_p0 }
  0x86   :  { %p483_p3 = pnand %p482_p2, %p476_p10 }
  0x88   :  { %486 = shalt.err (!%p483_p3)  }
  0x89   :  { %s487_s10 = scalar_lea.vmem %s730_s17, 16  ;;  %p492_p5 = scmp.lt.s32.totalorder %s730_s17, %s651_s21 }
  0x8a   :  { %p488_p4 = scmp.ne.s32.totalorder %s730_s17, %s487_s10  ;;  %p493_p6 = scmp.lt.s32.totalorder %s677_s12, %s487_s10 }
  0x8c   :  { %p494_p7 = por %p493_p6, %p492_p5 }
  0x8e   :  { %p495_p8 = pnand %p494_p7, %p488_p4 }
  0x90   :  { %498 = shalt.err (!%p495_p8)  }
  0x91   :  { %111 = dma.hbm_to_vmem [thread:$0]  %s98_s5, 16, %s730_s17, [#allocation2 + $0x5] }
  0x92   :  { %s307_s11 = sshll.u32 %s727_s18, 4  ;;  %s308_s0 = sld [smem:[#allocation4 + $0x7]] }
  0x93   :  { %s115_s15 = scalar_lea.hbm %s839_s1, %s307_s11 }
  0x94   :  { %s499_s16 = scalar_lea.hbm %s115_s15, 16  ;;  %p502_p10 = scmp.lt.u32.totalorder %s115_s15, %s839_s1 }
  0x95   :  { %p500_p9 = scmp.ne.s32.totalorder %s115_s15, %s499_s16  ;;  %p503_p12 = scmp.lt.u32.totalorder %s668_s8, %s499_s16 }
  0x96   :  { %p505_p0 = scmp.lt.u32.totalorder %s499_s16, %s115_s15 }
  0x97   :  { %p504_p13 = por %p503_p12, %p502_p10 }
  0x99   :  { %p506_p1 = por %p505_p0, %p504_p13 }
  0x9b   :  { %p507_p2 = pnand %p506_p1, %p500_p9 }
  0x9d   :  { %510 = shalt.err (!%p507_p2)  }
  0x9e   :  { %s511_s17 = scalar_lea.vmem %s745_s27, 16  ;;  %p516_p4 = scmp.lt.s32.totalorder %s745_s27, %s651_s21 }
  0x9f   :  { %p512_p3 = scmp.ne.s32.totalorder %s745_s27, %s511_s17  ;;  %p517_p5 = scmp.lt.s32.totalorder %s677_s12, %s511_s17 }
  0xa1   :  { %p518_p6 = por %p517_p5, %p516_p4 }
  0xa3   :  { %p519_p7 = pnand %p518_p6, %p512_p3 }
  0xa5   :  { %522 = shalt.err (!%p519_p7)  }
  0xa6   :  { %128 = dma.hbm_to_vmem [thread:$0]  %s115_s15, 16, %s745_s27, [#allocation2 + $0x6] }
  0xa7   :  { %s619_s18 = smov [#allocation5 + $0x7]   ;;  %s309_s23 = sshll.u32 %s308_s0, 4 }
  0xa8   :  { %s142_s22 = sshll.u32 %s619_s18, 4  ;;  %s132_s28 = scalar_lea.hbm %s839_s1, %s309_s23  ;;  %s143_s22 = int_to_ptr.vmem [resolvable:$true] %s142_s22 }
  0xa9   :  { %s523_s29 = scalar_lea.hbm %s132_s28, 16  ;;  %p526_p9 = scmp.lt.u32.totalorder %s132_s28, %s839_s1 }
  0xaa   :  { %p524_p8 = scmp.ne.s32.totalorder %s132_s28, %s523_s29  ;;  %p527_p10 = scmp.lt.u32.totalorder %s668_s8, %s523_s29 }
  0xab   :  { %p529_p13 = scmp.lt.u32.totalorder %s523_s29, %s132_s28 }
  0xac   :  { %p528_p12 = por %p527_p10, %p526_p9 }
  0xae   :  { %p530_p0 = por %p529_p13, %p528_p12 }
  0xb0   :  { %p531_p1 = pnand %p530_p0, %p524_p8 }
  0xb2   :  { %534 = shalt.err (!%p531_p1)  }
  0xb3   :  { %s535_s27 = scalar_lea.vmem %s143_s22, 16  ;;  %p540_p3 = scmp.lt.s32.totalorder %s143_s22, %s651_s21 }
  0xb4   :  { %p536_p2 = scmp.ne.s32.totalorder %s143_s22, %s535_s27  ;;  %p541_p4 = scmp.lt.s32.totalorder %s677_s12, %s535_s27 }
  0xb6   :  { %p542_p5 = por %p541_p4, %p540_p3 }
  0xb8   :  { %p543_p6 = pnand %p542_p5, %p536_p2 }
  0xba   :  { %546 = shalt.err (!%p543_p6)  }
  0xbb   :  { %145 = dma.hbm_to_vmem [thread:$0]  %s132_s28, 16, %s143_s22, [#allocation2 + $0x7] }
  0xbc   :  { %s780_s3 = smov 0  }
  0xbd LB: > { %p152_p7 = scmp.lt.s32.totalorder %s609_s3, 0  ;;  %s153_s4 = ssub.s32 0, %s609_s3  ;;  %s609_s3 = sphi %s780_s3, %s151_s3  }
  0xbe   : > { %s310_s5 = smin.u32 %s609_s3, %s153_s4  ;;  %s789_s6 = sadd.s32 8, %s609_s3 }
  0xbf   : > { %s155_s7 = sand.u32 7, %s310_s5   ;;  %p166_p8 = scmp.lt.s32.totalorder %s789_s6, 15 }
  0xc0   : > { %s156_s9 = ssub.s32 0, %s155_s7 }
  0xc1   : > { %s844_s9 = smov (!%p152_p7, %s156_s9), %s155_s7 }
  0xc2   : > { %s167_s10 = scalar_select %p166_p8, %s789_s6, 15 }
  0xc3   : > { %p312_p9 = scmp.lt.s32.totalorder %s844_s9, 0  ;;  %s162_s11 = sadd.s32 8, %s844_s9 }
  0xc4   : > { %s168_s0 = sld [smem:[#allocation4 + %s167_s10]] }
  0xc5   : > { %s846_s11 = smov (!%p312_p9, %s162_s11), %s844_s9 }
  0xc6   : > { %s793_s13 = scalar_lea.sflag [#allocation2], %s846_s11 }
  0xc7   : > { %603 = dma.done.wait %s793_s13, 16 }
  0xc8   : > { %604 = vsyncadd %s793_s13, 4294967280  ;;  %p325_p10 = scmp.lt.s32.totalorder %s789_s6, 16  ;;  %s288_s20 = scalar_lea.vmem [#allocation5], %s609_s3 }
  0xc9   : > { %s289_s17 = scalar_lea.vmem %s288_s20, 8 [#allocation5] }
  0xca   : > { %s314_s14 = sshll.u32 %s168_s0, 4  ;;  %s188_s18 = sshll.u32 %s289_s17, 4  ;;  %s189_s18 = int_to_ptr.vmem [resolvable:$true] %s188_s18 }
  0xcb   : > { %s179_s19 = scalar_lea.hbm %s839_s1, %s314_s14 }
  0xcc   : > { %s547_s22 = scalar_lea.hbm %s179_s19, 16  ;;  %p552_p1 = scmp.lt.u32.totalorder %s179_s19, %s839_s1 }
  0xcd   : > { %p548_p12 = scmp.ne.s32.totalorder %s179_s19, %s547_s22  ;;  %p553_p2 = scmp.lt.u32.totalorder %s668_s8, %s547_s22 }
  0xce   : > { %p555_p4 = scmp.lt.u32.totalorder %s547_s22, %s179_s19 }
  0xcf   : > { %p549_p13 = pnand %p548_p12, %p325_p10  ;;  %p554_p3 = por %p553_p2, %p552_p1 }
  0xd1   : > { %p550_p0 = pneg %p549_p13  ;;  %p556_p5 = por %p555_p4, %p554_p3 }
  0xd3   : > { %p557_p6 = pnand %p556_p5, %p550_p0 }
  0xd5   : > { %560 = shalt.err (!%p557_p6)  }
  0xd6   : > { %s561_s26 = scalar_lea.vmem %s189_s18, 16  ;;  %p568_p12 = scmp.lt.s32.totalorder %s189_s18, %s651_s21 }
  0xd7   : > { %p562_p7 = scmp.ne.s32.totalorder %s189_s18, %s561_s26  ;;  %p569_p13 = scmp.lt.s32.totalorder %s677_s12, %s561_s26 }
  0xd9   : > { %p563_p8 = pnand %p562_p7, %p325_p10  ;;  %p570_p11 = por %p569_p13, %p568_p12 }
  0xdb   : > { %p564_p9 = pneg %p563_p8 }
  0xdd   : > { %p571_p1 = pnand %p570_p11, %p564_p9 }
  0xdf   : > { %574 = shalt.err (!%p571_p1)  }
  0xe0   : > { %324 = dma.hbm_to_vmem [thread:$0]  (%p325_p10), %s179_s19, 16, %s189_s18, %s793_s13 }
  0xe1   : > { %s151_s3 = sadd.s32 1, %s609_s3  }
  0xe2   : > { %p148_p0 = scmp.ge.s32.totalorder %s151_s3, 16  }
  0xe3   :  { %v192_v0 = vld [vmem:[#allocation5] sm:$0xff] (%p148_p0)  ;;  %v193_v1 = vld [vmem:[#allocation5 + $0x8] sm:$0xff] (%p148_p0)  ;;  %p576_p11 = scmp.ne.s32.totalorder (%p148_p0), %s651_s21, %s677_s12  ;;  %p581_p10 = scmp.lt.s32.totalorder (%p148_p0), %s677_s12, %s677_s12 }
  0xe4   :  { %150 = sbr.rel (!%p148_p0) target bundleno = 189 (0xbd), region = 99  ;;  %v194_v2 = vmul.f32 (%p148_p0), 11.313708, %v192_v0  ;;  %v195_v3 = vmul.f32 (%p148_p0), 11.313708, %v193_v1  ;;  %p842_p2 = scmp.lt.s32.totalorder (%p148_p0), %s651_s21, %s651_s21 }
  0xe6   :  { %196 = vst [vmem:[#allocation5] sm:$0xff] (%p148_p0), %v194_v2  ;;  %197 = vst [vmem:[#allocation5 + $0x8] sm:$0xff] (%p148_p0), %v195_v3  ;;  %p582_p3 = por (%p148_p0), %p581_p10, %p842_p2 }
  0xe8   :  { %p583_p4 = pnand (%p148_p0), %p582_p3, %p576_p11 }
  0xeb   :  { %586 = shalt.err (!%p583_p4)
}
  0xec   :  { %s587_s1 = scalar_lea.hbm %s840_s2, 256 }
  0xed   :  { %p588_p5 = scmp.ne.s32.totalorder %s840_s2, %s587_s1  ;;  %p591_p6 = scmp.lt.u32.totalorder %s587_s1, %s840_s2 }
  0xef   :  { %p593_p7 = pnand %p591_p6, %p588_p5 }
  0xf1   :  { %596 = shalt.err (!%p593_p7)
}
  0xf2   :  { %s620_s3 = smov 128   ;;  %s621_s12 = smov 8  }
  0xf3   :  { %209 = dma.vmem_to_hbm [thread:$0]  %s651_s21, 256, %s840_s2, [#allocation6], %s620_s3, %s620_s3, %s621_s12  }
  0xf4   :  { %605 = dma.done.wait [#allocation6], 256  }
  0xf5   :  { %606 = vsyncadd [#allocation6], 4294967040 }
  0xf6   :  { %213 = vsyncpa [#allocation6], 1 }
  0xf7   :  { %214 = vsyncmov [#allocation2] }
  0xfa   :  { %s215_s6 = vpop.sfrf %214 }
  0xfb   :  { %p315_p8 = scmp.ne.s32.totalorder %s215_s6, 0 }
  0xfd   :  { %219 = shalt.err (%p315_p8)  }
  0xfe   :  { %221 = vsyncmov [#allocation2 + $0x1] }
 0x101   :  { %s222_s7 = vpop.sfrf %221 }
 0x102   :  { %p316_p9 = scmp.ne.s32.totalorder %s222_s7, 0 }
 0x104   :  { %226 = shalt.err (%p316_p9)  }
 0x105   :  { %228 = vsyncmov [#allocation2 + $0x2] }
 0x108   :  { %s229_s9 = vpop.sfrf %228 }
 0x109   :  { %p317_p12 = scmp.ne.s32.totalorder %s229_s9, 0 }
 0x10b   :  { %233 = shalt.err (%p317_p12)  }
 0x10c   :  { %235 = vsyncmov [#allocation2 + $0x3] }
 0x10f   :  { %s236_s10 = vpop.sfrf %235 }
 0x110   :  { %p318_p13 = scmp.ne.s32.totalorder %s236_s10, 0 }
 0x112   :  { %240 = shalt.err (%p318_p13)  }
 0x113   :  { %242 = vsyncmov [#allocation2 + $0x4] }
 0x116   :  { %s243_s2 = vpop.sfrf %242 }
 0x117   :  { %p319_p1 = scmp.ne.s32.totalorder %s243_s2, 0 }
 0x119   :  { %247 = shalt.err (%p319_p1)  }
 0x11a   :  { %249 = vsyncmov [#allocation2 + $0x5] }
 0x11d   :  { %s250_s21 = vpop.sfrf %249 }
 0x11e   :  { %p320_p0 = scmp.ne.s32.totalorder %s250_s21, 0 }
 0x120   :  { %254 = shalt.err (%p320_p0)  }
 0x121   :  { %256 = vsyncmov [#allocation2 + $0x6] }
 0x124   :  { %s257_s11 = vpop.sfrf %256 }
 0x125   :  { %p321_p11 = scmp.ne.s32.totalorder %s257_s11, 0 }
 0x127   :  { %261 = shalt.err (%p321_p11)  }
 0x128   :  { %263 = vsyncmov [#allocation2 + $0x7] }
 0x12b   :  { %s264_s0 = vpop.sfrf %263 }
 0x12c   :  { %p322_p10 = scmp.ne.s32.totalorder %s264_s0, 0 }
 0x12e   :  { %268 = shalt.err (%p322_p10)  }

</bundles_post_ra>
